<compile_context>
chip_gen: v7x
topology: tpu7x:2x2x1
jax: 0.10.0
libtpu: 0.0.40
codegen_flags: <defaults>
</compile_context>

<pallas_src>
import functools

import jax
import jax.numpy as jnp
from jax.experimental import pallas as pl
from jax.experimental.pallas import tpu as pltpu


def _vae_kernel(x_ref, eps_ref,
                w1_ref, b1_ref,
                wh_ref, bh_ref,
                w3_ref, b3_ref,
                w4_ref, b4_ref,
                recon_ref, mu_logvar_ref):
    """One row tile of encode -> reparameterize -> decode (all 4 matmuls fused)."""
    f32 = jnp.float32
    mm_dtype = w1_ref.dtype          # matmul operand dtype (f32 or bf16)

    x = x_ref[...].astype(mm_dtype)

    # encode: h1 = relu(x @ W1 + b1)
    h1 = jnp.dot(x, w1_ref[...], preferred_element_type=f32) + b1_ref[...]
    h1 = jnp.maximum(h1, 0.0)

    # fused heads: [mu | logvar] = h1 @ [W21 | W22] + [b21 | b22]
    ml = jnp.dot(h1.astype(mm_dtype), wh_ref[...],
                 preferred_element_type=f32) + bh_ref[...]
    z_dim = mu_logvar_ref.shape[-1] // 2
    mu = ml[:, :z_dim]
    logvar = ml[:, z_dim:]

    # reparameterize: z = mu + eps * exp(0.5 * logvar)   (all f32 elementwise)
    std = jnp.exp(0.5 * logvar)
    z = mu + eps_ref[...].astype(f32) * std

    # decode: sigmoid(relu(z @ W3 + b3) @ W4 + b4)
    h3 = jnp.dot(z.astype(mm_dtype), w3_ref[...],
                 preferred_element_type=f32) + b3_ref[...]
    h3 = jnp.maximum(h3, 0.0)
    logits = jnp.dot(h3.astype(mm_dtype), w4_ref[...],
                     preferred_element_type=f32) + b4_ref[...]

    # sigmoid = 1 / (1 + exp(-logits)); exp on EUP, reciprocal via pl primitive.
    recon_ref[...] = pl.reciprocal(1.0 + jnp.exp(-logits))
    mu_logvar_ref[...] = ml


def init_vae_params(key, input_size, z_dim, dtype=jnp.float32):
    """Deterministic parameter init (Kaiming-uniform-ish like nn.Linear)."""
    def linear(k, fan_in, fan_out):
        kw, kb = jax.random.split(k)
        bound = 1.0 / jnp.sqrt(jnp.float32(fan_in))
        w = jax.random.uniform(kw, (fan_in, fan_out), dtype, -bound, bound)
        b = jax.random.uniform(kb, (1, fan_out), dtype, -bound, bound)
        return w, b

    keys = jax.random.split(key, 5)
    params = {}
    params["w1"], params["b1"] = linear(keys[0], input_size, 32)
    params["w21"], params["b21"] = linear(keys[1], 32, z_dim)
    params["w22"], params["b22"] = linear(keys[2], 32, z_dim)
    params["w3"], params["b3"] = linear(keys[3], z_dim, 64)
    params["w4"], params["b4"] = linear(keys[4], 64, input_size)
    return params


@functools.partial(jax.jit, static_argnames=("block_rows", "matmul_dtype"))
def vae_forward(x, eps, params, *, block_rows=2048, matmul_dtype=None):
    """x: (B, T, C) f32, eps: (B*T, z_dim) -> (recon (B,T,C), mu, logvar) f32."""
    B, T, C = x.shape
    N = B * T
    z_dim = params["w21"].shape[1]

    x2d = x.reshape(N, C)

    # Fuse the two heads: pure concat, mathematically identical to fc21/fc22.
    w_head = jnp.concatenate([params["w21"], params["w22"]], axis=1)
    b_head = jnp.concatenate([params["b21"], params["b22"]], axis=1)

    w1, w3, w4 = params["w1"], params["w3"], params["w4"]
    b1, b3, b4 = params["b1"], params["b3"], params["b4"]
    # Biases are always f32: they are added onto the f32 MXU accumulator.
    b1, b_head, b3, b4 = (b.astype(jnp.float32) for b in (b1, b_head, b3, b4))

    if matmul_dtype is not None:
        md = jnp.dtype(matmul_dtype)
        x2d = x2d.astype(md)
        eps = eps.astype(md)
        w1, w_head, w3, w4 = (w.astype(md) for w in (w1, w_head, w3, w4))

    # ---- row tiling: pad N to a multiple of the tile (and of 8) ----------
    tn = int(block_rows)
    n_pad8 = ((N + 7) // 8) * 8
    if n_pad8 <= tn:
        tn = n_pad8
        n_pad = n_pad8
    else:
        n_pad = ((N + tn - 1) // tn) * tn
    if n_pad != N:
        x2d = jnp.pad(x2d, ((0, n_pad - N), (0, 0)))
        eps = jnp.pad(eps, ((0, n_pad - N), (0, 0)))
    grid = (n_pad // tn,)

    def row_spec(feat):
        return pl.BlockSpec((tn, feat), lambda i: (i, 0))

    def full_spec(a):
        # Full-array block, constant index -> stays resident in VMEM.
        return pl.BlockSpec(a.shape, lambda i: (0, 0))

    operands = (x2d, eps, w1, b1, w_head, b_head, w3, b3, w4, b4)
    in_specs = [
        row_spec(C), row_spec(z_dim),
        full_spec(w1), full_spec(b1),
        full_spec(w_head), full_spec(b_head),
        full_spec(w3), full_spec(b3),
        full_spec(w4), full_spec(b4),
    ]

    recon2d, mu_logvar = pl.pallas_call(
        _vae_kernel,
        grid=grid,
        in_specs=in_specs,
        out_specs=(row_spec(C), row_spec(2 * z_dim)),
        out_shape=(
            jax.ShapeDtypeStruct((n_pad, C), jnp.float32),
            jax.ShapeDtypeStruct((n_pad, 2 * z_dim), jnp.float32),
        ),
        compiler_params=pltpu.CompilerParams(
            dimension_semantics=("parallel",)),
    )(*operands)

    recon = recon2d[:N].reshape(B, T, C)
    mu = mu_logvar[:N, :z_dim]
    logvar = mu_logvar[:N, z_dim:]
    return recon, mu, logvar


def vae_forward_reference(x, eps, params):
    """Plain-JAX f32 reference of the PyTorch forward (for sanity checks)."""
    B, T, C = x.shape
    x2d = x.reshape(B * T, C).astype(jnp.float32)
    h1 = jax.nn.relu(x2d @ params["w1"] + params["b1"])
    mu = h1 @ params["w21"] + params["b21"]
    logvar = h1 @ params["w22"] + params["b22"]
    z = mu + eps.astype(jnp.float32) * jnp.exp(0.5 * logvar)
    h3 = jax.nn.relu(z @ params["w3"] + params["b3"])
    logits = h3 @ params["w4"] + params["b4"]
    recon = 1.0 / (1.0 + jnp.exp(-logits))
    return recon.reshape(B, T, C), mu, logvar


if __name__ == "__main__":
    key = jax.random.PRNGKey(0)
    k_params, k_x, k_eps, k_x2, k_eps2 = jax.random.split(key, 5)

    input_size, z_dim = 16, 8
    params = init_vae_params(k_params, input_size, z_dim)

    # ---- test 1: small shape, single tile, f32 ---------------------------
    B, T = 2, 8
    x = jax.random.normal(k_x, (B, T, input_size), jnp.float32)
    eps = jax.random.normal(k_eps, (B * T, z_dim), jnp.float32)
    recon, mu, logvar = vae_forward(x, eps, params)
    jax.block_until_ready((recon, mu, logvar))

    r_ref, m_ref, lv_ref = vae_forward_reference(x, eps, params)
    assert recon.shape == (B, T, input_size)
    assert mu.shape == (B * T, z_dim) and logvar.shape == (B * T, z_dim)
    assert jnp.allclose(recon, r_ref, atol=1e-5)
    assert jnp.allclose(mu, m_ref, atol=1e-5)
    assert jnp.allclose(logvar, lv_ref, atol=1e-5)

    # ---- test 2: multiple grid steps + tail padding, f32 ------------------
    B2, T2 = 3, 300            # N = 900 -> padded to 1024, grid = 2 @ 512 rows
    x2 = jax.random.normal(k_x2, (B2, T2, input_size), jnp.float32)
    eps2 = jax.random.normal(k_eps2, (B2 * T2, z_dim), jnp.float32)
    recon2, mu2, lv2 = vae_forward(x2, eps2, params, block_rows=512)
    jax.block_until_ready((recon2, mu2, lv2))

    r2_ref, m2_ref, lv2_ref = vae_forward_reference(x2, eps2, params)
    assert recon2.shape == (B2, T2, input_size)
    assert jnp.allclose(recon2, r2_ref, atol=1e-5)
    assert jnp.allclose(mu2, m2_ref, atol=1e-5)
    assert jnp.allclose(lv2, lv2_ref, atol=1e-5)

    # ---- test 3: bf16 matmul / input path (memory-bound traffic saver) ----
    recon3, mu3, lv3 = vae_forward(x2, eps2, params, block_rows=512,
                                   matmul_dtype=jnp.bfloat16)
    jax.block_until_ready((recon3, mu3, lv3))
    assert float(jnp.max(jnp.abs(recon3 - r2_ref))) < 0.1
    assert float(jnp.max(jnp.abs(mu3 - m2_ref))) < 0.25
    assert float(jnp.max(jnp.abs(lv3 - lv2_ref))) < 0.25

    print("KERNEL_OK")
</pallas_src>

<mosaic_0001>
module attributes {stable_mosaic.version = 11 : i64} {
  func.func @_vae_kernel(%arg0: i32, %arg1: memref<16x16xf32, #tpu.memory_space<vmem>>, %arg2: memref<16x8xf32, #tpu.memory_space<vmem>>, %arg3: memref<16x32xf32, #tpu.memory_space<vmem>>, %arg4: memref<1x32xf32, #tpu.memory_space<vmem>>, %arg5: memref<32x16xf32, #tpu.memory_space<vmem>>, %arg6: memref<1x16xf32, #tpu.memory_space<vmem>>, %arg7: memref<8x64xf32, #tpu.memory_space<vmem>>, %arg8: memref<1x64xf32, #tpu.memory_space<vmem>>, %arg9: memref<64x16xf32, #tpu.memory_space<vmem>>, %arg10: memref<1x16xf32, #tpu.memory_space<vmem>>, %arg11: memref<16x16xf32, #tpu.memory_space<vmem>>, %arg12: memref<16x16xf32, #tpu.memory_space<vmem>>) attributes {dimension_semantics = [#tpu.dimension_semantics<parallel>], iteration_bounds = array<i64: 1>, scalar_prefetch = 0 : i64, scratch_operands = 0 : i64, tpu.core_type = #tpu.core_type<tc>, window_params = [{transform_indices = @transform_0, window_bounds = array<i64: 16, 16>}, {transform_indices = @transform_1, window_bounds = array<i64: 16, 8>}, {pipeline_mode = #tpu.pipeline_mode<synchronous>, transform_indices = @transform_2, window_bounds = array<i64: 16, 32>}, {pipeline_mode = #tpu.pipeline_mode<synchronous>, transform_indices = @transform_3, window_bounds = array<i64: 1, 32>}, {pipeline_mode = #tpu.pipeline_mode<synchronous>, transform_indices = @transform_4, window_bounds = array<i64: 32, 16>}, {pipeline_mode = #tpu.pipeline_mode<synchronous>, transform_indices = @transform_5, window_bounds = array<i64: 1, 16>}, {pipeline_mode = #tpu.pipeline_mode<synchronous>, transform_indices = @transform_6, window_bounds = array<i64: 8, 64>}, {pipeline_mode = #tpu.pipeline_mode<synchronous>, transform_indices = @transform_7, window_bounds = array<i64: 1, 64>}, {pipeline_mode = #tpu.pipeline_mode<synchronous>, transform_indices = @transform_8, window_bounds = array<i64: 64, 16>}, {pipeline_mode = #tpu.pipeline_mode<synchronous>, transform_indices = @transform_9, window_bounds = array<i64: 1, 16>}, {transform_indices = @transform_10, window_bounds = array<i64: 16, 16>}, {transform_indices = @transform_11, window_bounds = array<i64: 16, 16>}]} {
    %c0 = arith.constant 0 : index
    %c0_0 = arith.constant 0 : index
    %0 = vector.load %arg1[%c0, %c0_0] : memref<16x16xf32, #tpu.memory_space<vmem>>, vector<16x16xf32>
    %c0_1 = arith.constant 0 : index
    %c0_2 = arith.constant 0 : index
    %1 = vector.load %arg3[%c0_1, %c0_2] : memref<16x32xf32, #tpu.memory_space<vmem>>, vector<16x32xf32>
    %cst = arith.constant dense<0.000000e+00> : vector<16x32xf32>
    %2 = tpu.matmul %0, %1, %cst {dimension_numbers = #tpu.dot_dimension_numbers<[1], [0], [0], [1], [0, 0, 1, 1], [], []>} : vector<16x16xf32>, vector<16x32xf32>, vector<16x32xf32> -> vector<16x32xf32>
    %c0_3 = arith.constant 0 : index
    %c0_4 = arith.constant 0 : index
    %3 = vector.load %arg4[%c0_3, %c0_4] : memref<1x32xf32, #tpu.memory_space<vmem>>, vector<1x32xf32>
    %4 = vector.broadcast %3 : vector<1x32xf32> to vector<16x32xf32>
    %5 = arith.addf %2, %4 : vector<16x32xf32>
    %cst_5 = arith.constant 0.000000e+00 : f32
    %6 = vector.broadcast %cst_5 : f32 to vector<16x32xf32>
    %7 = arith.maximumf %5, %6 : vector<16x32xf32>
    %c0_6 = arith.constant 0 : index
    %c0_7 = arith.constant 0 : index
    %8 = vector.load %arg5[%c0_6, %c0_7] : memref<32x16xf32, #tpu.memory_space<vmem>>, vector<32x16xf32>
    %cst_8 = arith.constant dense<0.000000e+00> : vector<16x16xf32>
    %9 = tpu.matmul %7, %8, %cst_8 {dimension_numbers = #tpu.dot_dimension_numbers<[1], [0], [0], [1], [0, 0, 1, 1], [], []>} : vector<16x32xf32>, vector<32x16xf32>, vector<16x16xf32> -> vector<16x16xf32>
    %c0_9 = arith.constant 0 : index
    %c0_10 = arith.constant 0 : index
    %10 = vector.load %arg6[%c0_9, %c0_10] : memref<1x16xf32, #tpu.memory_space<vmem>>, vector<1x16xf32>
    %11 = vector.broadcast %10 : vector<1x16xf32> to vector<16x16xf32>
    %12 = arith.addf %9, %11 : vector<16x16xf32>
    %13 = vector.extract_strided_slice %12 {offsets = [0, 0], sizes = [16, 8], strides = [1, 1]} : vector<16x16xf32> to vector<16x8xf32>
    %14 = vector.extract_strided_slice %12 {offsets = [0, 8], sizes = [16, 8], strides = [1, 1]} : vector<16x16xf32> to vector<16x8xf32>
    %cst_11 = arith.constant 5.000000e-01 : f32
    %15 = vector.broadcast %cst_11 : f32 to vector<16x8xf32>
    %16 = arith.mulf %15, %14 : vector<16x8xf32>
    %17 = math.exp %16 : vector<16x8xf32>
    %c0_12 = arith.constant 0 : index
    %c0_13 = arith.constant 0 : index
    %18 = vector.load %arg2[%c0_12, %c0_13] : memref<16x8xf32, #tpu.memory_space<vmem>>, vector<16x8xf32>
    %19 = arith.mulf %18, %17 : vector<16x8xf32>
    %20 = arith.addf %13, %19 : vector<16x8xf32>
    %c0_14 = arith.constant 0 : index
    %c0_15 = arith.constant 0 : index
    %21 = vector.load %arg7[%c0_14, %c0_15] : memref<8x64xf32, #tpu.memory_space<vmem>>, vector<8x64xf32>
    %cst_16 = arith.constant dense<0.000000e+00> : vector<16x64xf32>
    %22 = tpu.matmul %20, %21, %cst_16 {dimension_numbers = #tpu.dot_dimension_numbers<[1], [0], [0], [1], [0, 0, 1, 1], [], []>} : vector<16x8xf32>, vector<8x64xf32>, vector<16x64xf32> -> vector<16x64xf32>
    %c0_17 = arith.constant 0 : index
    %c0_18 = arith.constant 0 : index
    %23 = vector.load %arg8[%c0_17, %c0_18] : memref<1x64xf32, #tpu.memory_space<vmem>>, vector<1x64xf32>
    %24 = vector.broadcast %23 : vector<1x64xf32> to vector<16x64xf32>
    %25 = arith.addf %22, %24 : vector<16x64xf32>
    %cst_19 = arith.constant 0.000000e+00 : f32
    %26 = vector.broadcast %cst_19 : f32 to vector<16x64xf32>
    %27 = arith.maximumf %25, %26 : vector<16x64xf32>
    %c0_20 = arith.constant 0 : index
    %c0_21 = arith.constant 0 : index
    %28 = vector.load %arg9[%c0_20, %c0_21] : memref<64x16xf32, #tpu.memory_space<vmem>>, vector<64x16xf32>
    %cst_22 = arith.constant dense<0.000000e+00> : vector<16x16xf32>
    %29 = tpu.matmul %27, %28, %cst_22 {dimension_numbers = #tpu.dot_dimension_numbers<[1], [0], [0], [1], [0, 0, 1, 1], [], []>} : vector<16x64xf32>, vector<64x16xf32>, vector<16x16xf32> -> vector<16x16xf32>
    %c0_23 = arith.constant 0 : index
    %c0_24 = arith.constant 0 : index
    %30 = vector.load %arg10[%c0_23, %c0_24] : memref<1x16xf32, #tpu.memory_space<vmem>>, vector<1x16xf32>
    %31 = vector.broadcast %30 : vector<1x16xf32> to vector<16x16xf32>
    %32 = arith.addf %29, %31 : vector<16x16xf32>
    %cst_25 = arith.constant 0.000000e+00 : f32
    %33 = vector.broadcast %cst_25 : f32 to vector<16x16xf32>
    %34 = arith.subf %33, %32 : vector<16x16xf32>
    %35 = math.exp %34 : vector<16x16xf32>
    %cst_26 = arith.constant 1.000000e+00 : f32
    %36 = vector.broadcast %cst_26 : f32 to vector<16x16xf32>
    %37 = arith.addf %36, %35 : vector<16x16xf32>
    %38 = tpu.reciprocal %37 : vector<16x16xf32> -> vector<16x16xf32>
    %c0_27 = arith.constant 0 : index
    %c0_28 = arith.constant 0 : index
    %39 = vector.load %arg11[%c0_27, %c0_28] : memref<16x16xf32, #tpu.memory_space<vmem>>, vector<16x16xf32>
    tpu.vector_store %arg11[%c0_27, %c0_28], %38 {strides = array<i32>} : memref<16x16xf32, #tpu.memory_space<vmem>>, vector<16x16xf32>,
    %c0_29 = arith.constant 0 : index
    %c0_30 = arith.constant 0 : index
    %40 = vector.load %arg12[%c0_29, %c0_30] : memref<16x16xf32, #tpu.memory_space<vmem>>, vector<16x16xf32>
    tpu.vector_store %arg12[%c0_29, %c0_30], %12 {strides = array<i32>} : memref<16x16xf32, #tpu.memory_space<vmem>>, vector<16x16xf32>,
    return
  }
  func.func @transform_0(%arg0: i32) -> (i32, i32) {
    %c0_i32 = arith.constant 0 : i32
    %c0_i32_0 = arith.constant 0 : i32
    return %arg0, %c0_i32 : i32, i32
  }
  func.func @transform_1(%arg0: i32) -> (i32, i32) {
    %c0_i32 = arith.constant 0 : i32
    %c0_i32_0 = arith.constant 0 : i32
    return %arg0, %c0_i32 : i32, i32
  }
  func.func @transform_2(%arg0: i32) -> (i32, i32) {
    %c0_i32 = arith.constant 0 : i32
    %c0_i32_0 = arith.constant 0 : i32
    %c0_i32_1 = arith.constant 0 : i32
    return %c0_i32, %c0_i32_0 : i32, i32
  }
  func.func @transform_3(%arg0: i32) -> (i32, i32) {
    %c0_i32 = arith.constant 0 : i32
    %c0_i32_0 = arith.constant 0 : i32
    %c0_i32_1 = arith.constant 0 : i32
    return %c0_i32, %c0_i32_0 : i32, i32
  }
  func.func @transform_4(%arg0: i32) -> (i32, i32) {
    %c0_i32 = arith.constant 0 : i32
    %c0_i32_0 = arith.constant 0 : i32
    %c0_i32_1 = arith.constant 0 : i32
    return %c0_i32, %c0_i32_0 : i32, i32
  }
  func.func @transform_5(%arg0: i32) -> (i32, i32) {
    %c0_i32 = arith.constant 0 : i32
    %c0_i32_0 = arith.constant 0 : i32
    %c0_i32_1 = arith.constant 0 : i32
    return %c0_i32, %c0_i32_0 : i32, i32
  }
  func.func @transform_6(%arg0: i32) -> (i32, i32) {
    %c0_i32 = arith.constant 0 : i32
    %c0_i32_0 = arith.constant 0 : i32
    %c0_i32_1 = arith.constant 0 : i32
    return %c0_i32, %c0_i32_0 : i32, i32
  }
  func.func @transform_7(%arg0: i32) -> (i32, i32) {
    %c0_i32 = arith.constant 0 : i32
    %c0_i32_0 = arith.constant 0 : i32
    %c0_i32_1 = arith.constant 0 : i32
    return %c0_i32, %c0_i32_0 : i32, i32
  }
  func.func @transform_8(%arg0: i32) -> (i32, i32) {
    %c0_i32 = arith.constant 0 : i32
    %c0_i32_0 = arith.constant 0 : i32
    %c0_i32_1 = arith.constant 0 : i32
    return %c0_i32, %c0_i32_0 : i32, i32
  }
  func.func @transform_9(%arg0: i32) -> (i32, i32) {
    %c0_i32 = arith.constant 0 : i32
    %c0_i32_0 = arith.constant 0 : i32
    %c0_i32_1 = arith.constant 0 : i32
    return %c0_i32, %c0_i32_0 : i32, i32
  }
  func.func @transform_10(%arg0: i32) -> (i32, i32) {
    %c0_i32 = arith.constant 0 : i32
    %c0_i32_0 = arith.constant 0 : i32
    return %arg0, %c0_i32 : i32, i32
  }
  func.func @transform_11(%arg0: i32) -> (i32, i32) {
    %c0_i32 = arith.constant 0 : i32
    %c0_i32_0 = arith.constant 0 : i32
    return %arg0, %c0_i32 : i32, i32
  }
}

</mosaic_0001>

<bundles_post_ra>
// kernel: vae_forward.1
= control target key start
LH: loop header
LB: loop body
LE: loop exit
PB: predicated region body
PF: predicated region fallthrough
CT: control target
= control target key end

     0   :  { %vm49_vm0 = vcmask 130048   ;;  %s771_s0 = inlined_call_operand.vmem [shape: f32[16,16], index: 0, kind: input, shape index: {}]   ;;  %s772_s1 = inlined_call_operand.vmem [shape: f32[16,8], index: 1, kind: input, shape index: {}]   ;;  %s773_s2 = inlined_call_operand.vmem [shape: f32[16,32], index: 2, kind: input, shape index: {}]   ;;  %s774_s3 = inlined_call_operand.vmem [shape: f32[1,32], index: 3, kind: input, shape index: {}]   ;;  %s775_s4 = inlined_call_operand.vmem [shape: f32[32,16], index: 4, kind: input, shape index: {}]   ;;  %s776_s5 = inlined_call_operand.vmem [shape: f32[1,16], index: 5, kind: input, shape index: {}]   ;;  %s777_s6 = inlined_call_operand.vmem [shape: f32[8,64], index: 6, kind: input, shape index: {}]   ;;  %s778_s7 = inlined_call_operand.vmem [shape: f32[1,64], index: 7, kind: input, shape index: {}]   ;;  %s779_s8 = inlined_call_operand.vmem [shape: f32[64,16], index: 8, kind: input, shape index: {}]   ;;  %s780_s9 = inlined_call_operand.vmem [shape: f32[1,16], index: 9, kind: input, shape index: {}]   ;;  %s781_s10 = inlined_call_operand.hbm [shape: f32[16,16], index: 10, kind: output, shape index: {0}]   ;;  %s782_s11 = inlined_call_operand.vmem [shape: f32[16,16], index: 11, kind: output, shape index: {1}]  }
   0x1   :  { %v40_v0 = vld [vmem:[%s773_s2] sm:$0xff]  ;;  %v41_v1 = vld [vmem:[%s773_s2 + $0x8] sm:$0xff] }
   0x2   :  { %v38_v2 = vld [vmem:[%s771_s0] sm:$0xff]  ;;  %v546_v3 = vpack.c.bf16 %v41_v1, %v40_v0  ;;  %v134_v5 = vld [vmem:[%s775_s4 + $0x8] sm:$0xff] }
   0x3   :  { %508 = vmatprep.mubr.msk.f32.mxu1 %vm49_vm0, %v38_v2  ;;  %v133_v4 = vld [vmem:[%s775_s4] sm:$0xff] }
   0x4   :  { %v550_v6 = vpack.c.bf16 %v134_v5, %v133_v4 }
   0x5   :  { %17 = vsyncpa [#allocation3], 0  ;;  %547 = vmatprep.subr.bf16.mxu1 %v546_v3  ;;  %v39_v7 = vld [vmem:[%s771_s0 + $0x8] sm:$0xff]  ;;  %v135_v8 = vld [vmem:[%s775_s4 + $0x10] sm:$0xff]  ;;  %vm144_vm1 = vcmask 261120   ;;  %s614_s28 = smov 120  }
   0x6   :  { %549 = vmatpush3.bf16.msra.mxu1 %v546_v3  ;;  %v136_v9 = vld [vmem:[%s775_s4 + $0x18] sm:$0xff]  ;;  %v469_v11 = vld [vmem:[%s774_s3] ss:$0 sm:$0xff]  ;;  %v339_v29 = vld [vmem:[%s779_s8 + $0x8] sm:$0xff]  ;;  %vm254_vm2 = vcmask 64512   ;;  %vm353_vm3 = vcmask 523264  }
   0x7   :  { %551 = vmatprep.subr.bf16.mxu1 %v550_v6  ;;  %v554_v10 = vpack.c.bf16 %v136_v9, %v135_v8  ;;  %v472_v18 = vld [vmem:[%s776_s5] ss:$0 sm:$0xff]  ;;  %v340_v30 = vld [vmem:[%s779_s8 + $0x10] sm:$0xff]  ;;  %v341_v32 = vld [vmem:[%s779_s8 + $0x18] sm:$0xff] }
   0x8   :  { %v246_v27 = vld [vmem:[%s777_s6] sm:$0xff]  ;;  %v562_v33 = vpack.c.bf16 %v341_v32, %v340_v30  ;;  %v343_v35 = vld [vmem:[%s779_s8 + $0x28] sm:$0xff]  ;;  %v344_v47 = vld [vmem:[%s779_s8 + $0x30] sm:$0xff] }
   0x9   :  { %509 = vmatmul.mubr.msk.f32.vlgmr.msra.gmra.mrb[0].mxu1 %vm49_vm0, %v39_v7  ;;  %v338_v28 = vld [vmem:[%s779_s8] sm:$0xff]  ;;  %v233_v42 = vld [vmem:[%s772_s1 + $0x8] sm:$0xff]  ;;  %v345_v48 = vld [vmem:[%s779_s8 + $0x38] sm:$0xff] }
   0xa   :  { %553 = vmatpush3.bf16.msra.mxu1 %v550_v6  ;;  %v558_v31 = vpack.c.bf16 %v339_v29, %v338_v28  ;;  %v342_v34 = vld [vmem:[%s779_s8 + $0x20] sm:$0xff]  ;;  %v570_v49 = vpack.c.bf16 %v345_v48, %v344_v47 }
   0xb   :  { %555 = vmatprep.subr.bf16.mxu1 %v554_v10  ;;  %v566_v37 = vpack.c.bf16 %v343_v35, %v342_v34  ;;  %v232_v39 = vld [vmem:[%s772_s1] sm:$0xff] }
   0xc   :  { %559 = vmatprep.subr.bf16.mxu0 %v558_v31  ;;  %v475_v50 = vld [vmem:[%s778_s7] ss:$0 sm:$0xff]  ;;  %s615_s7 = smov [#allocation2]  }
   0xd   :  { %561 = vmatpush3.bf16.msra.mxu0 %v558_v31  ;;  %v478_v57 = vld [vmem:[%s780_s9] ss:$0 sm:$0xff]  ;;  %s454_s8 = sshll.u32 %s615_s7, 4  ;;  %s455_s8 = int_to_ptr.vmem [resolvable:$true] %s454_s8 }
   0xe   :  { %557 = vmatpush3.bf16.msra.mxu1 %v554_v10  ;;  %563 = vmatprep.subr.bf16.mxu0 %v562_v33  ;;  %s590_s9 = scalar_lea.vmem %s455_s8, 256  ;;  %p595_p1 = scmp.lt.s32.totalorder %s455_s8, %s455_s8 }
   0xf   :  { %522 = vmatprep.subr.mxu1 %v246_v27  ;;  %p591_p0 = scmp.ne.s32.totalorder %s455_s8, %s590_s9  ;;  %p596_p2 = scmp.lt.s32.totalorder %s590_s9, %s590_s9 }
  0x11   :  { %565 = vmatpush3.bf16.msra.mxu0 %v562_v33  ;;  %p597_p3 = por %p596_p2, %p595_p1 }
  0x12   :  { %567 = vmatprep.subr.bf16.mxu0 %v566_v37 }
  0x13   :  { %p598_p4 = pnand %p597_p3, %p591_p0 }
  0x15   :  { %569 = vmatpush3.bf16.msra.mxu0 %v566_v37 }
  0x16   :  { %571 = vmatprep.subr.bf16.mxu0 %v570_v49 }
  0x19   :  { %573 = vmatpush3.bf16.msra.mxu0 %v570_v49 }
  0xdc   :  { %v510_v12 = vpop.f32.mrb[0].mxu1 }
  0xdd   :  { %v128_v13 = vadd.f32 %v510_v12, %v469_v11  ;;  %v122_v14 = vpop.f32.mrb[1].mxu1 }
  0xde   :  { %v123_v15 = vadd.f32 %v469_v11, %v122_v14 }
  0xdf   :  { %v132_v17 = vmax.f32 %v128_v13, 0.0 }
  0xe0   :  { %v131_v16 = vmax.f32 %v123_v15, 0.0 }
  0xe2   :  { %519 = vmatprep.mubr.msk.f32.mxu1 %vm144_vm1, %v131_v16 }
  0xe3   :  { %520 = vmatmul.mubr.msk.f32.vlgmr.msra.gmra.mrb[2].mxu1 %vm144_vm1, %v132_v17 }
  0xe4   :  { %523 = vmatpush3.msra.mxu1 %v246_v27 }
 0x1b6   :  { %v521_v19 = vpop.f32.mrb[2].mxu1 }
 0x1b7   :  { %v223_v20 = vadd.f32 %v521_v19, %v472_v18  ;;  %v217_v21 = vpop.f32.mrb[3].mxu1 }
 0x1b8   :  { %v218_v22 = vadd.f32 %v472_v18, %v217_v21 }
 0x1b9   :  { %448 = vst.msk [vmem:[%s782_s11 + $0x8] sm:$0xff] %vm49_vm0, %v223_v20  ;;  %v227_v23 = vmul.f32 0.5, %v223_v20 }
 0x1ba   :  { %v226_v24 = vmul.f32 0.5, %v218_v22  ;;  %447 = vst.msk [vmem:[%s782_s11] sm:$0xff] %vm49_vm0, %v218_v22 }
 0x1bb   :  { %v230_v26 = vmul.f32 1.442695, %v227_v23 }
 0x1bc   :  { %v228_v25 = vmul.f32 1.442695, %v226_v24 }
 0x1be   :  { %578 = vpow2.f32 %v228_v25 }
 0x1bf   :  { %580 = vpow2.f32 %v230_v26 }
 0x1c8   :  { %v579_v36 = vpop.eup %578 }
 0x1c9   :  { %236 = vrot.lane.b32.xlu0 %v579_v36, %s614_s28  ;;  %v581_v38 = vpop.eup %580 }
 0x1cd   :  { %238 = vrot.lane.b32.xlu0 %v581_v38, %s614_s28 }
 0x23b   :  { %v237_v40 = vpop.permute.xlu0 %236 }
 0x23c   :  { %v242_v41 = vmul.f32 %v237_v40, %v232_v39 }
 0x23e   :  { %v244_v43 = vadd.f32 %v242_v41, %v218_v22 }
 0x23f   :  { %v239_v44 = vpop.permute.xlu0 %238 }
 0x240   :  { %v243_v45 = vmul.f32 %v239_v44, %v233_v42  ;;  %524 = vmatprep.mubr.msk.f32.mxu1 %vm254_vm2, %v244_v43 }
 0x242   :  { %v245_v46 = vadd.f32 %v243_v45, %v223_v20 }
 0x244   :  { %525 = vmatmul.mubr.msk.f32.vlgmr.msra.gmra.mrb[4].mxu1 %vm254_vm2, %v245_v46 }
 0x317   :  { %v526_v51 = vpop.f32.mrb[4].mxu1 }
 0x318   :  { %v333_v52 = vadd.f32 %v526_v51, %v475_v50  ;;  %v327_v53 = vpop.f32.mrb[5].mxu1 }
 0x319   :  { %v328_v54 = vadd.f32 %v475_v50, %v327_v53 }
 0x31a   :  { %v337_v56 = vmax.f32 %v333_v52, 0.0 }
 0x31b   :  { %v336_v55 = vmax.f32 %v328_v54, 0.0 }
 0x31d   :  { %543 = vmatprep.mubr.msk.f32.mxu0 %vm353_vm3, %v336_v55 }
 0x31e   :  { %544 = vmatmul.mubr.msk.f32.vlgmr.msra.gmra.mrb[0].mxu0 %vm353_vm3, %v337_v56 }
 0x3f1   :  { %v545_v58 = vpop.f32.mrb[0].mxu0 }
 0x3f2   :  { %v432_v59 = vadd.f32 %v545_v58, %v478_v57  ;;  %v426_v60 = vpop.f32.mrb[1].mxu0 }
 0x3f3   :  { %v427_v61 = vadd.f32 %v478_v57, %v426_v60 }
 0x3f4   :  { %v436_v62 = vsub.f32 0.0, %v432_v59 }
 0x3f5   :  { %v435_v63 = vsub.f32 0.0, %v427_v61 }
 0x3f6   :  { %v439_v0 = vmul.f32 1.442695, %v436_v62 }
 0x3f7   :  { %v437_v1 = vmul.f32 1.442695, %v435_v63 }
 0x3f8   :  { %582 = vpow2.f32 %v439_v0 }
 0x3f9   :  { %584 = vpow2.f32 %v437_v1 }
 0x402   :  { %v583_v2 = vpop.eup %582 }
 0x403   :  { %v585_v3 = vpop.eup %584  ;;  %v442_v4 = vadd.f32 1.0, %v583_v2 }
 0x404   :  { %v441_v5 = vadd.f32 1.0, %v585_v3 }
 0x405   :  { %586 = vrcp.f32 %v442_v4 }
 0x406   :  { %588 = vrcp.f32 %v441_v5 }
 0x40f   :  { %v587_v6 = vpop.eup %586 }
 0x410   :  { %v589_v7 = vpop.eup %588  ;;  %446 = vst.msk [vmem:[#allocation2 + $0x8] sm:$0xff] %vm49_vm0, %v587_v6 }
 0x411   :  { %445 = vst.msk [vmem:[#allocation2] sm:$0xff] %vm49_vm0, %v589_v7 }
 0x412   :  { %601 = shalt.err (!%p598_p4)
}
 0x413   :  { %s602_s19 = scalar_lea.hbm %s781_s10, 256 }
 0x414   :  { %p603_p5 = scmp.ne.s32.totalorder %s781_s10, %s602_s19  ;;  %p606_p6 = scmp.lt.u32.totalorder %s602_s19, %s781_s10 }
 0x416   :  { %p608_p7 = pnand %p606_p6, %p603_p5 }
 0x418   :  { %611 = shalt.err (!%p608_p7)
}
 0x419   :  { %s616_s11 = smov 128   ;;  %s617_s24 = smov 8  }
 0x41a   :  { %460 = dma.vmem_to_hbm [thread:$0]  %s455_s8, 256, %s781_s10, [#allocation3], %s616_s11, %s616_s11, %s617_s24  }
 0x41b   :  { %612 = dma.done.wait [#allocation3], 256  }
 0x41c   :  { %613 = vsyncadd [#allocation3], 4294967040 }
 0x41d   :  { %468 = vsyncpa [#allocation3], 1 }

</bundles_post_ra>
